<compile_context>
chip_gen: v5e
topology: v5e:2x2
jax: 0.10.0
libtpu: 0.0.40
codegen_flags: <defaults>
</compile_context>

<pallas_src>
import jax
import jax.numpy as jnp
import numpy as np
from jax import lax
from jax.experimental import pallas as pl
from jax.experimental.pallas import tpu as pltpu


def _fused_conv_block_kernel(x_ref, a1_ref, s1_ref, a2_ref, s2_ref, o_ref,
                             xpad_ref, ypad_ref):
    """Fused (conv3x3 + BN + ReLU) x2 for one whole image.

    x_ref:    (1, H, W*Cin)      lane-packed NHWC input image
    a1_ref:   (3, W*Cin, W*C1)   stage-1 banded weights (BN scale folded in)
    s1_ref:   (1, W*C1)          stage-1 shift (conv bias + BN shift, packed)
    a2_ref:   (3, W*C1, W*C2)    stage-2 banded weights
    s2_ref:   (1, W*C2)          stage-2 shift
    o_ref:    (1, H, W*C2)       lane-dense output image
    xpad_ref: (H+2, W*Cin)       VMEM scratch: input with 1 zero row top/bottom
    ypad_ref: (H+2, W*C1)        VMEM scratch: stage-1 output, zero-bordered
    """
    H = x_ref.shape[1]
    WCin = x_ref.shape[2]
    WC1 = s1_ref.shape[1]
    WC2 = s2_ref.shape[1]

    # Row-padded copy of the image.  Only the two border rows are zeroed (the
    # body rows are fully overwritten each step), and they are re-zeroed every
    # grid step so the image axis can safely be 'parallel'.
    xpad_ref[0:1, :] = jnp.zeros((1, WCin), jnp.float32)
    xpad_ref[H + 1:H + 2, :] = jnp.zeros((1, WCin), jnp.float32)
    xpad_ref[1:H + 1, :] = x_ref[0]
    ypad_ref[0:1, :] = jnp.zeros((1, WC1), jnp.float32)
    ypad_ref[H + 1:H + 2, :] = jnp.zeros((1, WC1), jnp.float32)

    # --- stage 1: conv1 + BN1 + ReLU for all H rows in one shot -------------
    # The banded a1_ref[ky] matrices implement the kx taps and the zero
    # padding along W; the ky taps are the three row-shifted matmuls below.
    acc1 = jnp.dot(xpad_ref[0:H, :], a1_ref[0],
                   preferred_element_type=jnp.float32)
    acc1 = acc1 + jnp.dot(xpad_ref[1:H + 1, :], a1_ref[1],
                          preferred_element_type=jnp.float32)
    acc1 = acc1 + jnp.dot(xpad_ref[2:H + 2, :], a1_ref[2],
                          preferred_element_type=jnp.float32)
    ypad_ref[1:H + 1, :] = jnp.maximum(acc1 + s1_ref[...], 0.0)

    # --- stage 2: conv2 + BN2 + ReLU -----------------------------------------
    acc2 = jnp.dot(ypad_ref[0:H, :], a2_ref[0],
                   preferred_element_type=jnp.float32)
    acc2 = acc2 + jnp.dot(ypad_ref[1:H + 1, :], a2_ref[1],
                          preferred_element_type=jnp.float32)
    acc2 = acc2 + jnp.dot(ypad_ref[2:H + 2, :], a2_ref[2],
                          preferred_element_type=jnp.float32)
    out = jnp.maximum(acc2 + s2_ref[...], 0.0)
    o_ref[...] = out.reshape(1, H, WC2).astype(o_ref.dtype)


def _pack_conv_bn(w, b, gamma, beta, mean, var, width, eps=1e-5):
    """Fold Conv2d(3x3, pad=1) + eval-BatchNorm into banded matmul weights.

    Returns:
      A:     (3, width*Cin, width*Cout)  A[ky] multiplies one lane-packed row
             (width*Cin,) of the input; the band implements the kx taps and
             the zero padding along W.  BN scale is folded into the weights.
      shift: (1, width*Cout)             conv bias + BN shift, lane-packed.
    """
    cout, cin = w.shape[0], w.shape[1]
    scale = gamma / jnp.sqrt(var + eps)                     # (Cout,)
    shift = beta + (b - mean) * scale                       # (Cout,)
    ws = w * scale[:, None, None, None]                     # (Cout,Cin,3,3)
    wt = jnp.transpose(ws, (2, 3, 1, 0))                    # (ky,kx,Cin,Cout)

    wi = jnp.arange(width)[:, None]                         # input column
    wo = jnp.arange(width)[None, :]                         # output column
    kx = wi - wo + 1                                        # (W, W)
    valid = (kx >= 0) & (kx <= 2)
    g = wt[:, jnp.clip(kx, 0, 2), :, :]                     # (3,W,W,Cin,Cout)
    g = jnp.where(valid[None, :, :, None, None], g, 0.0)
    A = jnp.transpose(g, (0, 1, 3, 2, 4)).reshape(3, width * cin, width * cout)
    shift_packed = jnp.tile(shift, (width,)).reshape(1, width * cout)
    return A.astype(jnp.float32), shift_packed.astype(jnp.float32)


def conv_block_forward(x_nchw, params, eps=1e-5):
    """Equivalent of conv_block.forward.  Input/output layout: NCHW."""
    N, Cin, H, W = x_nchw.shape
    C1 = params["w1"].shape[0]
    C2 = params["w2"].shape[0]

    # Lane-packed activations: (N, H, W*C) with W*C on the 128-lane axis.
    x = jnp.transpose(x_nchw, (0, 2, 3, 1)).reshape(N, H, W * Cin)
    x = x.astype(jnp.float32)

    A1, s1 = _pack_conv_bn(params["w1"], params["b1"], params["g1"],
                           params["be1"], params["m1"], params["v1"], W, eps)
    A2, s2 = _pack_conv_bn(params["w2"], params["b2"], params["g2"],
                           params["be2"], params["m2"], params["v2"], W, eps)

    out = pl.pallas_call(
        _fused_conv_block_kernel,
        out_shape=jax.ShapeDtypeStruct((N, H, W * C2), jnp.float32),
        grid_spec=pltpu.PrefetchScalarGridSpec(
            num_scalar_prefetch=0,
            grid=(N,),
            in_specs=[
                # One whole image per grid step.
                pl.BlockSpec((1, H, W * Cin), lambda n: (n, 0, 0)),
                # Weights/shifts: constant block index -> fetched once.
                pl.BlockSpec((3, W * Cin, W * C1), lambda n: (0, 0, 0)),
                pl.BlockSpec((1, W * C1), lambda n: (0, 0)),
                pl.BlockSpec((3, W * C1, W * C2), lambda n: (0, 0, 0)),
                pl.BlockSpec((1, W * C2), lambda n: (0, 0)),
            ],
            out_specs=pl.BlockSpec((1, H, W * C2), lambda n: (n, 0, 0)),
            scratch_shapes=[pltpu.VMEM((H + 2, W * Cin), jnp.float32),
                            pltpu.VMEM((H + 2, W * C1), jnp.float32)],
        ),
        compiler_params=pltpu.CompilerParams(
            dimension_semantics=("parallel",)),
    )(x, A1, s1, A2, s2)

    out = out.reshape(N, H, W, C2)
    return jnp.transpose(out, (0, 3, 1, 2))  # NHWC -> NCHW


# ------------------------- pure-JAX reference -------------------------------
def _reference_stage(x_nchw, w, b, g, be, m, v, eps=1e-5):
    y = lax.conv_general_dilated(
        x_nchw, w, window_strides=(1, 1), padding=((1, 1), (1, 1)),
        dimension_numbers=("NCHW", "OIHW", "NCHW"),
    )
    y = y + b[None, :, None, None]
    y = (y - m[None, :, None, None]) / jnp.sqrt(v[None, :, None, None] + eps)
    y = y * g[None, :, None, None] + be[None, :, None, None]
    return jnp.maximum(y, 0.0)


def _reference_forward(x_nchw, p):
    y = _reference_stage(x_nchw, p["w1"], p["b1"], p["g1"], p["be1"], p["m1"], p["v1"])
    y = _reference_stage(y, p["w2"], p["b2"], p["g2"], p["be2"], p["m2"], p["v2"])
    return y


if __name__ == "__main__":
    key = jax.random.PRNGKey(0)
    N, in_ch, out_ch, H, W = 2, 4, 8, 16, 16

    ks = jax.random.split(key, 16)
    params = {
        # conv1: Conv2d(in_ch, out_ch, 3, padding=1, bias=True)
        "w1": 0.1 * jax.random.normal(ks[0], (out_ch, in_ch, 3, 3), jnp.float32),
        "b1": 0.1 * jax.random.normal(ks[1], (out_ch,), jnp.float32),
        # bn1: BatchNorm2d(out_ch)  (inference semantics: running stats)
        "g1": 1.0 + 0.1 * jax.random.normal(ks[2], (out_ch,), jnp.float32),
        "be1": 0.1 * jax.random.normal(ks[3], (out_ch,), jnp.float32),
        "m1": 0.05 * jax.random.normal(ks[4], (out_ch,), jnp.float32),
        "v1": 1.0 + 0.1 * jax.random.uniform(ks[5], (out_ch,), jnp.float32),
        # conv2: Conv2d(out_ch, out_ch, 3, padding=1, bias=True)
        "w2": 0.1 * jax.random.normal(ks[6], (out_ch, out_ch, 3, 3), jnp.float32),
        "b2": 0.1 * jax.random.normal(ks[7], (out_ch,), jnp.float32),
        # bn2
        "g2": 1.0 + 0.1 * jax.random.normal(ks[8], (out_ch,), jnp.float32),
        "be2": 0.1 * jax.random.normal(ks[9], (out_ch,), jnp.float32),
        "m2": 0.05 * jax.random.normal(ks[10], (out_ch,), jnp.float32),
        "v2": 1.0 + 0.1 * jax.random.uniform(ks[11], (out_ch,), jnp.float32),
    }

    x = jax.random.normal(ks[12], (N, in_ch, H, W), jnp.float32)

    out = jax.block_until_ready(jax.jit(conv_block_forward)(x, params))
    ref = jax.block_until_ready(_reference_forward(x, params))

    assert out.shape == (N, out_ch, H, W)
    assert np.allclose(np.asarray(out), np.asarray(ref), rtol=5e-4, atol=5e-4)

    print("KERNEL_OK")
</pallas_src>

<mosaic_0001>
module attributes {stable_mosaic.version = 11 : i64} {
  func.func @_fused_conv_block_kernel(%arg0: i32, %arg1: memref<1x16x64xf32, #tpu.memory_space<vmem>>, %arg2: memref<3x64x128xf32, #tpu.memory_space<vmem>>, %arg3: memref<1x128xf32, #tpu.memory_space<vmem>>, %arg4: memref<3x128x128xf32, #tpu.memory_space<vmem>>, %arg5: memref<1x128xf32, #tpu.memory_space<vmem>>, %arg6: memref<1x16x128xf32, #tpu.memory_space<vmem>>, %arg7: memref<18x64xf32, #tpu.memory_space<vmem>>, %arg8: memref<18x128xf32, #tpu.memory_space<vmem>>) attributes {dimension_semantics = [#tpu.dimension_semantics<parallel>], iteration_bounds = array<i64: 2>, scalar_prefetch = 0 : i64, scratch_operands = 2 : i64, tpu.core_type = #tpu.core_type<tc>, window_params = [{transform_indices = @transform_0, window_bounds = array<i64: 1, 16, 64>}, {pipeline_mode = #tpu.pipeline_mode<synchronous>, transform_indices = @transform_1, window_bounds = array<i64: 3, 64, 128>}, {pipeline_mode = #tpu.pipeline_mode<synchronous>, transform_indices = @transform_2, window_bounds = array<i64: 1, 128>}, {pipeline_mode = #tpu.pipeline_mode<synchronous>, transform_indices = @transform_3, window_bounds = array<i64: 3, 128, 128>}, {pipeline_mode = #tpu.pipeline_mode<synchronous>, transform_indices = @transform_4, window_bounds = array<i64: 1, 128>}, {transform_indices = @transform_5, window_bounds = array<i64: 1, 16, 128>}]} {
    %cst = arith.constant 0.000000e+00 : f32
    %0 = vector.broadcast %cst : f32 to vector<1x64xf32>
    %c0 = arith.constant 0 : index
    %c0_0 = arith.constant 0 : index
    %1 = vector.load %arg7[%c0, %c0_0] : memref<18x64xf32, #tpu.memory_space<vmem>>, vector<1x64xf32>
    tpu.vector_store %arg7[%c0, %c0_0], %0 {strides = array<i32>} : memref<18x64xf32, #tpu.memory_space<vmem>>, vector<1x64xf32>,
    %cst_1 = arith.constant 0.000000e+00 : f32
    %2 = vector.broadcast %cst_1 : f32 to vector<1x64xf32>
    %c17 = arith.constant 17 : index
    %c0_2 = arith.constant 0 : index
    %3 = vector.load %arg7[%c17, %c0_2] : memref<18x64xf32, #tpu.memory_space<vmem>>, vector<1x64xf32>
    tpu.vector_store %arg7[%c17, %c0_2], %2 {strides = array<i32>} : memref<18x64xf32, #tpu.memory_space<vmem>>, vector<1x64xf32>,
    %c0_3 = arith.constant 0 : index
    %c0_4 = arith.constant 0 : index
    %c0_5 = arith.constant 0 : index
    %4 = vector.load %arg1[%c0_3, %c0_4, %c0_5] : memref<1x16x64xf32, #tpu.memory_space<vmem>>, vector<1x16x64xf32>
    %5 = vector.shape_cast %4 : vector<1x16x64xf32> to vector<16x64xf32>
    %c1 = arith.constant 1 : index
    %c0_6 = arith.constant 0 : index
    %6 = vector.load %arg7[%c1, %c0_6] : memref<18x64xf32, #tpu.memory_space<vmem>>, vector<16x64xf32>
    tpu.vector_store %arg7[%c1, %c0_6], %5 {strides = array<i32>} : memref<18x64xf32, #tpu.memory_space<vmem>>, vector<16x64xf32>,
    %cst_7 = arith.constant 0.000000e+00 : f32
    %7 = vector.broadcast %cst_7 : f32 to vector<1x128xf32>
    %c0_8 = arith.constant 0 : index
    %c0_9 = arith.constant 0 : index
    %8 = vector.load %arg8[%c0_8, %c0_9] : memref<18x128xf32, #tpu.memory_space<vmem>>, vector<1x128xf32>
    tpu.vector_store %arg8[%c0_8, %c0_9], %7 {strides = array<i32>} : memref<18x128xf32, #tpu.memory_space<vmem>>, vector<1x128xf32>,
    %cst_10 = arith.constant 0.000000e+00 : f32
    %9 = vector.broadcast %cst_10 : f32 to vector<1x128xf32>
    %c17_11 = arith.constant 17 : index
    %c0_12 = arith.constant 0 : index
    %10 = vector.load %arg8[%c17_11, %c0_12] : memref<18x128xf32, #tpu.memory_space<vmem>>, vector<1x128xf32>
    tpu.vector_store %arg8[%c17_11, %c0_12], %9 {strides = array<i32>} : memref<18x128xf32, #tpu.memory_space<vmem>>, vector<1x128xf32>,
    %c0_13 = arith.constant 0 : index
    %c0_14 = arith.constant 0 : index
    %11 = vector.load %arg7[%c0_13, %c0_14] : memref<18x64xf32, #tpu.memory_space<vmem>>, vector<16x64xf32>
    %c0_15 = arith.constant 0 : index
    %c0_16 = arith.constant 0 : index
    %c0_17 = arith.constant 0 : index
    %12 = vector.load %arg2[%c0_15, %c0_16, %c0_17] : memref<3x64x128xf32, #tpu.memory_space<vmem>>, vector<1x64x128xf32>
    %13 = vector.shape_cast %12 : vector<1x64x128xf32> to vector<64x128xf32>
    %cst_18 = arith.constant dense<0.000000e+00> : vector<16x128xf32>
    %14 = tpu.matmul %11, %13, %cst_18 {dimension_numbers = #tpu.dot_dimension_numbers<[1], [0], [0], [1], [0, 0, 1, 1], [], []>} : vector<16x64xf32>, vector<64x128xf32>, vector<16x128xf32> -> vector<16x128xf32>
    %c1_19 = arith.constant 1 : index
    %c0_20 = arith.constant 0 : index
    %15 = vector.load %arg7[%c1_19, %c0_20] : memref<18x64xf32, #tpu.memory_space<vmem>>, vector<16x64xf32>
    %c1_21 = arith.constant 1 : index
    %c0_22 = arith.constant 0 : index
    %c0_23 = arith.constant 0 : index
    %16 = vector.load %arg2[%c1_21, %c0_22, %c0_23] : memref<3x64x128xf32, #tpu.memory_space<vmem>>, vector<1x64x128xf32>
    %17 = vector.shape_cast %16 : vector<1x64x128xf32> to vector<64x128xf32>
    %cst_24 = arith.constant dense<0.000000e+00> : vector<16x128xf32>
    %18 = tpu.matmul %15, %17, %cst_24 {dimension_numbers = #tpu.dot_dimension_numbers<[1], [0], [0], [1], [0, 0, 1, 1], [], []>} : vector<16x64xf32>, vector<64x128xf32>, vector<16x128xf32> -> vector<16x128xf32>
    %19 = arith.addf %14, %18 : vector<16x128xf32>
    %c2 = arith.constant 2 : index
    %c0_25 = arith.constant 0 : index
    %20 = vector.load %arg7[%c2, %c0_25] : memref<18x64xf32, #tpu.memory_space<vmem>>, vector<16x64xf32>
    %c2_26 = arith.constant 2 : index
    %c0_27 = arith.constant 0 : index
    %c0_28 = arith.constant 0 : index
    %21 = vector.load %arg2[%c2_26, %c0_27, %c0_28] : memref<3x64x128xf32, #tpu.memory_space<vmem>>, vector<1x64x128xf32>
    %22 = vector.shape_cast %21 : vector<1x64x128xf32> to vector<64x128xf32>
    %cst_29 = arith.constant dense<0.000000e+00> : vector<16x128xf32>
    %23 = tpu.matmul %20, %22, %cst_29 {dimension_numbers = #tpu.dot_dimension_numbers<[1], [0], [0], [1], [0, 0, 1, 1], [], []>} : vector<16x64xf32>, vector<64x128xf32>, vector<16x128xf32> -> vector<16x128xf32>
    %24 = arith.addf %19, %23 : vector<16x128xf32>
    %c0_30 = arith.constant 0 : index
    %c0_31 = arith.constant 0 : index
    %25 = vector.load %arg3[%c0_30, %c0_31] : memref<1x128xf32, #tpu.memory_space<vmem>>, vector<1x128xf32>
    %26 = vector.broadcast %25 : vector<1x128xf32> to vector<16x128xf32>
    %27 = arith.addf %24, %26 : vector<16x128xf32>
    %cst_32 = arith.constant 0.000000e+00 : f32
    %28 = vector.broadcast %cst_32 : f32 to vector<16x128xf32>
    %29 = arith.maximumf %27, %28 : vector<16x128xf32>
    %c1_33 = arith.constant 1 : index
    %c0_34 = arith.constant 0 : index
    %30 = vector.load %arg8[%c1_33, %c0_34] : memref<18x128xf32, #tpu.memory_space<vmem>>, vector<16x128xf32>
    tpu.vector_store %arg8[%c1_33, %c0_34], %29 {strides = array<i32>} : memref<18x128xf32, #tpu.memory_space<vmem>>, vector<16x128xf32>,
    %c0_35 = arith.constant 0 : index
    %c0_36 = arith.constant 0 : index
    %31 = vector.load %arg8[%c0_35, %c0_36] : memref<18x128xf32, #tpu.memory_space<vmem>>, vector<16x128xf32>
    %c0_37 = arith.constant 0 : index
    %c0_38 = arith.constant 0 : index
    %c0_39 = arith.constant 0 : index
    %32 = vector.load %arg4[%c0_37, %c0_38, %c0_39] : memref<3x128x128xf32, #tpu.memory_space<vmem>>, vector<1x128x128xf32>
    %33 = vector.shape_cast %32 : vector<1x128x128xf32> to vector<128x128xf32>
    %cst_40 = arith.constant dense<0.000000e+00> : vector<16x128xf32>
    %34 = tpu.matmul %31, %33, %cst_40 {dimension_numbers = #tpu.dot_dimension_numbers<[1], [0], [0], [1], [0, 0, 1, 1], [], []>} : vector<16x128xf32>, vector<128x128xf32>, vector<16x128xf32> -> vector<16x128xf32>
    %c1_41 = arith.constant 1 : index
    %c0_42 = arith.constant 0 : index
    %35 = vector.load %arg8[%c1_41, %c0_42] : memref<18x128xf32, #tpu.memory_space<vmem>>, vector<16x128xf32>
    %c1_43 = arith.constant 1 : index
    %c0_44 = arith.constant 0 : index
    %c0_45 = arith.constant 0 : index
    %36 = vector.load %arg4[%c1_43, %c0_44, %c0_45] : memref<3x128x128xf32, #tpu.memory_space<vmem>>, vector<1x128x128xf32>
    %37 = vector.shape_cast %36 : vector<1x128x128xf32> to vector<128x128xf32>
    %cst_46 = arith.constant dense<0.000000e+00> : vector<16x128xf32>
    %38 = tpu.matmul %35, %37, %cst_46 {dimension_numbers = #tpu.dot_dimension_numbers<[1], [0], [0], [1], [0, 0, 1, 1], [], []>} : vector<16x128xf32>, vector<128x128xf32>, vector<16x128xf32> -> vector<16x128xf32>
    %39 = arith.addf %34, %38 : vector<16x128xf32>
    %c2_47 = arith.constant 2 : index
    %c0_48 = arith.constant 0 : index
    %40 = vector.load %arg8[%c2_47, %c0_48] : memref<18x128xf32, #tpu.memory_space<vmem>>, vector<16x128xf32>
    %c2_49 = arith.constant 2 : index
    %c0_50 = arith.constant 0 : index
    %c0_51 = arith.constant 0 : index
    %41 = vector.load %arg4[%c2_49, %c0_50, %c0_51] : memref<3x128x128xf32, #tpu.memory_space<vmem>>, vector<1x128x128xf32>
    %42 = vector.shape_cast %41 : vector<1x128x128xf32> to vector<128x128xf32>
    %cst_52 = arith.constant dense<0.000000e+00> : vector<16x128xf32>
    %43 = tpu.matmul %40, %42, %cst_52 {dimension_numbers = #tpu.dot_dimension_numbers<[1], [0], [0], [1], [0, 0, 1, 1], [], []>} : vector<16x128xf32>, vector<128x128xf32>, vector<16x128xf32> -> vector<16x128xf32>
    %44 = arith.addf %39, %43 : vector<16x128xf32>
    %c0_53 = arith.constant 0 : index
    %c0_54 = arith.constant 0 : index
    %45 = vector.load %arg5[%c0_53, %c0_54] : memref<1x128xf32, #tpu.memory_space<vmem>>, vector<1x128xf32>
    %46 = vector.broadcast %45 : vector<1x128xf32> to vector<16x128xf32>
    %47 = arith.addf %44, %46 : vector<16x128xf32>
    %cst_55 = arith.constant 0.000000e+00 : f32
    %48 = vector.broadcast %cst_55 : f32 to vector<16x128xf32>
    %49 = arith.maximumf %47, %48 : vector<16x128xf32>
    %50 = vector.shape_cast %49 : vector<16x128xf32> to vector<1x16x128xf32>
    %c0_56 = arith.constant 0 : index
    %c0_57 = arith.constant 0 : index
    %c0_58 = arith.constant 0 : index
    %51 = vector.load %arg6[%c0_56, %c0_57, %c0_58] : memref<1x16x128xf32, #tpu.memory_space<vmem>>, vector<1x16x128xf32>
    tpu.vector_store %arg6[%c0_56, %c0_57, %c0_58], %50 {strides = array<i32>} : memref<1x16x128xf32, #tpu.memory_space<vmem>>, vector<1x16x128xf32>,
    return
  }
  func.func @transform_0(%arg0: i32) -> (i32, i32, i32) {
    %c0_i32 = arith.constant 0 : i32
    %c0_i32_0 = arith.constant 0 : i32
    %c0_i32_1 = arith.constant 0 : i32
    return %arg0, %c0_i32, %c0_i32_0 : i32, i32, i32
  }
  func.func @transform_1(%arg0: i32) -> (i32, i32, i32) {
    %c0_i32 = arith.constant 0 : i32
    %c0_i32_0 = arith.constant 0 : i32
    %c0_i32_1 = arith.constant 0 : i32
    %c0_i32_2 = arith.constant 0 : i32
    return %c0_i32, %c0_i32_0, %c0_i32_1 : i32, i32, i32
  }
  func.func @transform_2(%arg0: i32) -> (i32, i32) {
    %c0_i32 = arith.constant 0 : i32
    %c0_i32_0 = arith.constant 0 : i32
    %c0_i32_1 = arith.constant 0 : i32
    return %c0_i32, %c0_i32_0 : i32, i32
  }
  func.func @transform_3(%arg0: i32) -> (i32, i32, i32) {
    %c0_i32 = arith.constant 0 : i32
    %c0_i32_0 = arith.constant 0 : i32
    %c0_i32_1 = arith.constant 0 : i32
    %c0_i32_2 = arith.constant 0 : i32
    return %c0_i32, %c0_i32_0, %c0_i32_1 : i32, i32, i32
  }
  func.func @transform_4(%arg0: i32) -> (i32, i32) {
    %c0_i32 = arith.constant 0 : i32
    %c0_i32_0 = arith.constant 0 : i32
    %c0_i32_1 = arith.constant 0 : i32
    return %c0_i32, %c0_i32_0 : i32, i32
  }
  func.func @transform_5(%arg0: i32) -> (i32, i32, i32) {
    %c0_i32 = arith.constant 0 : i32
    %c0_i32_0 = arith.constant 0 : i32
    %c0_i32_1 = arith.constant 0 : i32
    return %arg0, %c0_i32, %c0_i32_0 : i32, i32, i32
  }
}

</mosaic_0001>

<bundles_post_ra>
// kernel: tile.13
= control target key start
LH: loop header
LB: loop body
LE: loop exit
PB: predicated region body
PF: predicated region fallthrough
CT: control target
= control target key end

     0   :  { %s28_s0 = inlined_call_operand.vmem [shape: f32[8], index: 0, kind: input, shape index: {}]   ;;  %s29_s1 = inlined_call_operand.vmem [shape: f32[16,8], index: 1, kind: output, shape index: {}]  }
   0x1   :  { %v4_v0 = vld [vmem:[%s28_s0] ss:$0 sm:$0xff] }
   0x2   :  { %5 = vst [vmem:[%s29_s1] sm:$0xff] %v4_v0 }
   0x3   :  { %8 = vst [vmem:[%s29_s1 + $0x8] sm:$0xff] %v4_v0 }

// kernel: tile.14
= control target key start
LH: loop header
LB: loop body
LE: loop exit
PB: predicated region body
PF: predicated region fallthrough
CT: control target
= control target key end

     0   :  { %s131_s10 = smov 120   ;;  %s132_s11 = smov 104   ;;  %vm3_vm0 = vcmask 64512   ;;  %vm9_vm1 = vcmask 1048512   ;;  %vm15_vm2 = vcmask 982912   ;;  %vm21_vm3 = vcmask 917312   ;;  %s207_s0 = inlined_call_operand.vmem [shape: f32[16,8], index: 0, kind: input, shape index: {}]   ;;  %s208_s1 = inlined_call_operand.vmem [shape: f32[1,128], index: 1, kind: output, shape index: {}]  }
   0x1   :  { %v101_v0 = vld [vmem:[%s207_s0 + $0xf] sm:$0x1]   ;;  %v103_v1 = vld [vmem:[%s207_s0 + $0xd] sm:$0x1]   ;;  %v105_v2 = vld [vmem:[%s207_s0 + $0xb] sm:$0x1]  }
   0x2   :  { %7 = vrot.lane.b32.xlu0 %v101_v0, %s131_s10  ;;  %19 = vrot.lane.b32.xlu1 %v103_v1, %s132_s11  ;;  %s133_s14 = smov 88   ;;  %v102_v3 = vld [vmem:[%s207_s0 + $0xe] sm:$0x1]   ;;  %v104_v4 = vld [vmem:[%s207_s0 + $0xc] sm:$0x1]   ;;  %s134_s19 = smov 112  }
   0x3   :  { %31 = vrot.lane.b32.xlu2 %v105_v2, %s133_s14  ;;  %s135_s20 = smov 96   ;;  %v106_v5 = vld [vmem:[%s207_s0 + $0xa] sm:$0x1]   ;;  %s136_s23 = smov 80   ;;  %v107_v6 = vld [vmem:[%s207_s0 + $0x9] sm:$0x1]  }
   0x4   :  { %v108_v7 = vld [vmem:[%s207_s0 + $0x8] sm:$0x1]   ;;  %s137_s28 = smov 72   ;;  %s138_s29 = smov 64   ;;  %v109_v8 = vld [vmem:[%s207_s0 + $0x7] sm:$0x1]  }
   0x5   :  { %s139_s3 = smov 56   ;;  %v110_v9 = vld [vmem:[%s207_s0 + $0x6] sm:$0x1]   ;;  %v111_v10 = vld [vmem:[%s207_s0 + $0x5] sm:$0x1]   ;;  %s140_s8 = smov 48  }
   0x6   :  { %s141_s9 = smov 40   ;;  %v112_v11 = vld [vmem:[%s207_s0 + $0x4] sm:$0x1]   ;;  %s142_s12 = smov 32   ;;  %v113_v12 = vld [vmem:[%s207_s0 + $0x3] sm:$0x1]  }
   0x7   :  { %v114_v13 = vld [vmem:[%s207_s0 + $0x2] sm:$0x1]   ;;  %s143_s17 = smov 24   ;;  %s144_s18 = smov 16   ;;  %v115_v14 = vld [vmem:[%s207_s0 + $0x1] sm:$0x1]  }
   0x8   :  { %s145_s21 = smov 8   ;;  %v2_v15 = vld [vmem:[%s207_s0] sm:$0x1]   ;;  %vm27_vm4 = vcmask 851712   ;;  %vm33_vm5 = vcmask 786112   ;;  %vm39_vm6 = vcmask 720512  }
   0x9   :  { %4 = vst.msk [vmem:[#allocation0] sm:$0x1] %vm3_vm0, %v2_v15   ;;  %vm45_vm7 = vcmask 654912   ;;  %vm51_vm8 = vcmask 589312   ;;  %vm57_vm9 = vcmask 523712   ;;  %vm63_vm10 = vcmask 458112  }
   0xa   :  { %13 = vrot.lane.b32.xlu0 %v102_v3, %s134_s19  ;;  %25 = vrot.lane.b32.xlu1 %v104_v4, %s135_s20  ;;  %vm69_vm11 = vcmask 392512   ;;  %vm75_vm12 = vcmask 326912   ;;  %vm81_vm13 = vcmask 261312   ;;  %vm87_vm14 = vcmask 195712  }
   0xb   :  { %37 = vrot.lane.b32.xlu2 %v106_v5, %s136_s23  ;;  %vm93_vm15 = vcmask 130112  }
  0x12   :  { %43 = vrot.lane.b32.xlu0 %v107_v6, %s137_s28  ;;  %49 = vrot.lane.b32.xlu1 %v108_v7, %s138_s29 }
  0x13   :  { %55 = vrot.lane.b32.xlu2 %v109_v8, %s139_s3 }
  0x1a   :  { %61 = vrot.lane.b32.xlu0 %v110_v9, %s140_s8  ;;  %67 = vrot.lane.b32.xlu1 %v111_v10, %s141_s9 }
  0x1b   :  { %73 = vrot.lane.b32.xlu2 %v112_v11, %s142_s12 }
  0x22   :  { %79 = vrot.lane.b32.xlu0 %v113_v12, %s143_s17  ;;  %85 = vrot.lane.b32.xlu1 %v114_v13, %s144_s18 }
  0x23   :  { %91 = vrot.lane.b32.xlu2 %v115_v14, %s145_s21 }
  0x5d   :  { %v32_v16 = vpop.permute.xlu2 %31  }
  0x65   :  { %v38_v17 = vpop.permute.xlu2 %37  }
  0x6d   :  { %v56_v18 = vpop.permute.xlu2 %55  }
  0x74   :  { %v8_v19 = vpop.permute.xlu0 %7   ;;  %v20_v20 = vpop.permute.xlu1 %19  }
  0x75   :  { %10 = vst.msk [vmem:[#allocation0] sm:$0x1] %vm9_vm1, %v8_v19   ;;  %v74_v21 = vpop.permute.xlu2 %73  }
  0x7c   :  { %v14_v22 = vpop.permute.xlu0 %13   ;;  %v26_v23 = vpop.permute.xlu1 %25  }
  0x7d   :  { %16 = vst.msk [vmem:[#allocation0] sm:$0x1] %vm15_vm2, %v14_v22   ;;  %v92_v24 = vpop.permute.xlu2 %91  }
  0x7e   :  { %22 = vst.msk [vmem:[#allocation0] sm:$0x1] %vm21_vm3, %v20_v20  }
  0x7f   :  { %28 = vst.msk [vmem:[#allocation0] sm:$0x1] %vm27_vm4, %v26_v23  }
  0x80   :  { %34 = vst.msk [vmem:[#allocation0] sm:$0x1] %vm33_vm5, %v32_v16  }
  0x81   :  { %40 = vst.msk [vmem:[#allocation0] sm:$0x1] %vm39_vm6, %v38_v17  }
  0x84   :  { %v44_v25 = vpop.permute.xlu0 %43   ;;  %v50_v26 = vpop.permute.xlu1 %49  }
  0x85   :  { %46 = vst.msk [vmem:[#allocation0] sm:$0x1] %vm45_vm7, %v44_v25  }
  0x86   :  { %52 = vst.msk [vmem:[#allocation0] sm:$0x1] %vm51_vm8, %v50_v26  }
  0x87   :  { %58 = vst.msk [vmem:[#allocation0] sm:$0x1] %vm57_vm9, %v56_v18  }
  0x8c   :  { %v62_v27 = vpop.permute.xlu0 %61   ;;  %v68_v28 = vpop.permute.xlu1 %67  }
  0x8d   :  { %64 = vst.msk [vmem:[#allocation0] sm:$0x1] %vm63_vm10, %v62_v27  }
  0x8e   :  { %70 = vst.msk [vmem:[#allocation0] sm:$0x1] %vm69_vm11, %v68_v28  }
  0x8f   :  { %76 = vst.msk [vmem:[#allocation0] sm:$0x1] %vm75_vm12, %v74_v21  }
  0x94   :  { %v80_v29 = vpop.permute.xlu0 %79   ;;  %v86_v30 = vpop.permute.xlu1 %85  }
  0x95   :  { %82 = vst.msk [vmem:[#allocation0] sm:$0x1] %vm81_vm13, %v80_v29  }
  0x96   :  { %88 = vst.msk [vmem:[#allocation0] sm:$0x1] %vm87_vm14, %v86_v30  }
  0x97   :  { %94 = vst.msk [vmem:[#allocation0] sm:$0x1] %vm93_vm15, %v92_v24  }
  0x9e   :  { %v97_v31 = vld [vmem:[#allocation0] sm:$0x1] }
  0x9f   :  { %100 = vst [vmem:[%s208_s1] sm:$0x1] %v97_v31 }

// kernel: conv_block_forward.1
= control target key start
LH: loop header
LB: loop body
LE: loop exit
PB: predicated region body
PF: predicated region fallthrough
CT: control target
= control target key end

     0   :  { %s675_s18 = smov 0   ;;  %s929_s0 = inlined_call_operand.vmem [shape: f32[2,16,64], index: 0, kind: input, shape index: {}]   ;;  %s930_s1 = inlined_call_operand.vmem [shape: f32[3,64,128], index: 1, kind: input, shape index: {}]   ;;  %s931_s2 = inlined_call_operand.vmem [shape: f32[1,128], index: 2, kind: input, shape index: {}]   ;;  %s932_s3 = inlined_call_operand.vmem [shape: f32[3,128,128], index: 3, kind: input, shape index: {}]   ;;  %s933_s4 = inlined_call_operand.vmem [shape: f32[1,128], index: 4, kind: input, shape index: {}]   ;;  %s934_s5 = inlined_call_operand.vmem [shape: f32[2,16,128], index: 5, kind: output, shape index: {}]  }
   0x1 LB: > { %s558_s19 = sadd.s32 4294967295, %s642_s18   ;;  %p562_p0 = scmp.ge.s32.totalorder %s642_s18, 1  ;;  %s642_s18 = sphi %s675_s18, %s15_s18  }
   0x2   : > { %p187_p1 = scmp.lt.s32.totalorder %s642_s18, 3 }
   0x4   : > { %p188_p2 = pnand %p562_p0, %p187_p1 }
   0x5   : > { %p215_p3 = scmp.lt.s32.totalorder (!%p188_p2), %s558_s19, 1 }
   0x6   : > { %191 = sbr.rel (%p188_p2) target bundleno = 339 (0x153), region = 40 }
   0xb   : > { %v574_v0 = vld [vmem:[%s930_s1 + $0x78] sm:$0xff]  ;;  %v573_v1 = vld [vmem:[%s930_s1 + $0x70] sm:$0xff]  ;;  %vm225_vm0 = vcmask 516096   ;;  %v572_v3 = vld [vmem:[%s930_s1 + $0x68] sm:$0xff]  ;;  %s936_s19 = smov (!%p215_p3, %s558_s19), 1  ;;  %v644_v5 = vmov 0.0  }
   0xc   : > { %270 = vmatpush.msra.mxu2 %v574_v0  ;;  %v244_v2 = vld [vmem:[%s930_s1 + $0x38] sm:$0xff]  ;;  %v243_v4 = vld [vmem:[%s930_s1 + $0x30] sm:$0xff]  ;;  %226 = vst.msk [vmem:[#allocation2] sm:$0x1] %vm225_vm0, %v644_v5  ;;  %v242_v6 = vld [vmem:[%s930_s1 + $0x28] sm:$0xff]  ;;  %s623_s9 = sshll.u32 %s936_s19, 4 }
   0xd   : > { %299 = vmatpush.msra.mxu1 %v244_v2  ;;  %227 = vst.msk [vmem:[#allocation2 + $0x11] sm:$0x1] %vm225_vm0, %v644_v5  ;;  %v571_v7 = vld [vmem:[%s930_s1 + $0x60] sm:$0xff]  ;;  %vm230_vm1 = vcmask 523264   ;;  %s219_s14 = scalar_lea.vmem %s929_s0, %s623_s9  ;;  %v570_v9 = vld [vmem:[%s930_s1 + $0x58] sm:$0xff]  ;;  %v569_v13 = vld [vmem:[%s930_s1 + $0x50] sm:$0xff]  ;;  %s224_s17 = scalar_lea.vmem %s934_s5, %s623_s9 }
   0xe   : > { %271 = vmatpush.msra.mxu2 %v573_v1  ;;  %233 = vst [vmem:[#allocation3] sm:$0x1] %v644_v5  ;;  %v241_v8 = vld [vmem:[%s930_s1 + $0x20] sm:$0xff]  ;;  %v229_v11 = vld [vmem:[%s219_s14 + $0x8] sm:$0xff]  ;;  %v240_v12 = vld [vmem:[%s930_s1 + $0x18] sm:$0xff] }
   0xf   : > { %300 = vmatpush.msra.mxu1 %v243_v4  ;;  %234 = vst [vmem:[#allocation3 + $0x11] sm:$0x1] %v644_v5  ;;  %v228_v10 = vld [vmem:[%s219_s14] sm:$0xff]  ;;  %v239_v14 = vld [vmem:[%s930_s1 + $0x10] sm:$0xff]  ;;  %v568_v15 = vld [vmem:[%s930_s1 + $0x48] sm:$0xff] }
  0x10   : > { %272 = vmatpush.msra.mxu2 %v572_v3  ;;  %231 = vst.msk [vmem:[#allocation2 + $0x1] sm:$0xff] %vm230_vm1, %v228_v10  ;;  %v238_v16 = vld [vmem:[%s930_s1 + $0x8] sm:$0xff]  ;;  %v567_v17 = vld [vmem:[%s930_s1 + $0x40] sm:$0xff]  ;;  %v586_v20 = vld [vmem:[%s930_s1 + $0xb8] sm:$0xff] }
  0x11   : > { %301 = vmatpush.msra.mxu1 %v242_v6  ;;  %232 = vst.msk [vmem:[#allocation2 + $0x9] sm:$0xff] %vm230_vm1, %v229_v11  ;;  %v237_v18 = vld [vmem:[%s930_s1] sm:$0xff]  ;;  %v585_v22 = vld [vmem:[%s930_s1 + $0xb0] sm:$0xff]  ;;  %v584_v23 = vld [vmem:[%s930_s1 + $0xa8] sm:$0xff] }
  0x12   : > { %273 = vmatpush.msra.mxu2 %v571_v7  ;;  %v583_v24 = vld [vmem:[%s930_s1 + $0xa0] sm:$0xff]  ;;  %v582_v26 = vld [vmem:[%s930_s1 + $0x98] sm:$0xff]  ;;  %v581_v28 = vld [vmem:[%s930_s1 + $0x90] sm:$0xff] }
  0x13   : > { %302 = vmatpush.msra.mxu1 %v241_v8  ;;  %v580_v29 = vld [vmem:[%s930_s1 + $0x88] sm:$0xff]  ;;  %v579_v30 = vld [vmem:[%s930_s1 + $0x80] sm:$0xff]  ;;  %v604_v33 = vld [vmem:[%s932_s3 + $0xf8] sm:$0xff] }
  0x14   : > { %274 = vmatpush.msra.mxu2 %v570_v9  ;;  %403 = vmatpush.msra.mxu3 %v604_v33  ;;  %v603_v34 = vld [vmem:[%s932_s3 + $0xf0] sm:$0xff]  ;;  %v602_v35 = vld [vmem:[%s932_s3 + $0xe8] sm:$0xff]  ;;  %v601_v36 = vld [vmem:[%s932_s3 + $0xe0] sm:$0xff] }
  0x15   : > { %303 = vmatpush.msra.mxu1 %v240_v12  ;;  %v383_v37 = vld [vmem:[%s932_s3 + $0x78] sm:$0xff]  ;;  %v382_v39 = vld [vmem:[%s932_s3 + $0x70] sm:$0xff]  ;;  %v381_v40 = vld [vmem:[%s932_s3 + $0x68] sm:$0xff] }
  0x16   : > { %275 = vmatpush.msra.mxu2 %v569_v13  ;;  %404 = vmatpush.msra.mxu3 %v603_v34  ;;  %v600_v38 = vld [vmem:[%s932_s3 + $0xd8] sm:$0xff]  ;;  %v599_v41 = vld [vmem:[%s932_s3 + $0xd0] sm:$0xff]  ;;  %v380_v42 = vld [vmem:[%s932_s3 + $0x60] sm:$0xff] }
  0x17   : > { %304 = vmatpush.msra.mxu1 %v239_v14  ;;  %v245_v19 = vld [vmem:[#allocation2 + $0x1] sm:$0xff]  ;;  %426 = vmatpush.msra.mxu0 %v383_v37  ;;  %v379_v45 = vld [vmem:[%s932_s3 + $0x58] sm:$0xff]  ;;  %v378_v48 = vld [vmem:[%s932_s3 + $0x50] sm:$0xff] }
  0x18   : > { %276 = vmatpush.msra.mxu2 %v568_v15  ;;  %v235_v21 = vld [vmem:[#allocation2] sm:$0xff]  ;;  %v246_v25 = vld [vmem:[#allocation2 + $0x9] sm:$0xff]  ;;  %405 = vmatpush.msra.mxu3 %v602_v35  ;;  %v620_v46 = vld [vmem:[%s932_s3 + $0x178] sm:$0xff] }
  0x19   : > { %305 = vmatpush.msra.mxu1 %v238_v16  ;;  %v236_v27 = vld [vmem:[#allocation2 + $0x8] sm:$0xff]  ;;  %427 = vmatpush.msra.mxu0 %v382_v39  ;;  %v597_v44 = vld [vmem:[%s932_s3 + $0xc0] sm:$0xff]  ;;  %v596_v47 = vld [vmem:[%s932_s3 + $0xb8] sm:$0xff] }
  0x1a   : > { %277 = vmatpush.msra.mxu2 %v567_v17  ;;  %v314_v31 = vld [vmem:[#allocation2 + $0x2] sm:$0xff]  ;;  %v315_v32 = vld [vmem:[#allocation2 + $0xa] sm:$0xff]  ;;  %406 = vmatpush.msra.mxu3 %v601_v36  ;;  %v375_v57 = vld [vmem:[%s932_s3 + $0x38] sm:$0xff] }
  0x1b   : > { %575 = vmatmul.msk.f32.vlgmr.msra.gmra.mxu2 %vm230_vm1, %v245_v19  ;;  %306 = vmatpush.msra.mxu1 %v237_v18  ;;  %v598_v43 = vld [vmem:[%s932_s3 + $0xc8] sm:$0xff]  ;;  %v619_v49 = vld [vmem:[%s932_s3 + $0x170] sm:$0xff]  ;;  %v376_v52 = vld [vmem:[%s932_s3 + $0x40] sm:$0xff] }
  0x1c   : > { %339 = vmatpush.msrb.mxu2 %v586_v20  ;;  %577 = vmatmul.msk.f32.vlgmr.msra.gmra.mxu1 %vm230_vm1, %v235_v21  ;;  %v377_v50 = vld [vmem:[%s932_s3 + $0x48] sm:$0xff]  ;;  %v617_v53 = vld [vmem:[%s932_s3 + $0x160] sm:$0xff]  ;;  %v595_v54 = vld [vmem:[%s932_s3 + $0xb0] sm:$0xff] }
  0x1d   : > { %407 = vmatpush.msra.mxu3 %v600_v38  ;;  %428 = vmatpush.msra.mxu0 %v381_v40  ;;  %v618_v51 = vld [vmem:[%s932_s3 + $0x168] sm:$0xff]  ;;  %v593_v56 = vld [vmem:[%s932_s3 + $0xa0] sm:$0xff]  ;;  %v616_v58 = vld [vmem:[%s932_s3 + $0x158] sm:$0xff] }
  0x1e   : > { %340 = vmatpush.msrb.mxu2 %v585_v22  ;;  %468 = vmatpush.msrb.mxu1 %v620_v46  ;;  %v594_v55 = vld [vmem:[%s932_s3 + $0xa8] sm:$0xff]  ;;  %v592_v59 = vld [vmem:[%s932_s3 + $0x98] sm:$0xff]  ;;  %v374_v60 = vld [vmem:[%s932_s3 + $0x30] sm:$0xff] }
  0x1f   : > { %408 = vmatpush.msra.mxu3 %v599_v41  ;;  %429 = vmatpush.msra.mxu0 %v380_v42  ;;  %v615_v61 = vld [vmem:[%s932_s3 + $0x150] sm:$0xff]  ;;  %v373_v63 = vld [vmem:[%s932_s3 + $0x28] sm:$0xff]  ;;  %v372_v2 = vld [vmem:[%s932_s3 + $0x20] sm:$0xff] }
  0x20   : > { %341 = vmatpush.msrb.mxu2 %v584_v23  ;;  %469 = vmatpush.msrb.mxu1 %v619_v49  ;;  %v591_v62 = vld [vmem:[%s932_s3 + $0x90] sm:$0xff]  ;;  %v614_v0 = vld [vmem:[%s932_s3 + $0x148] sm:$0xff]  ;;  %v613_v3 = vld [vmem:[%s932_s3 + $0x140] sm:$0xff] }
  0x21   : > { %409 = vmatpush.msra.mxu3 %v598_v43  ;;  %430 = vmatpush.msra.mxu0 %v379_v45  ;;  %v590_v1 = vld [vmem:[%s932_s3 + $0x88] sm:$0xff]  ;;  %v589_v4 = vld [vmem:[%s932_s3 + $0x80] sm:$0xff]  ;;  %v371_v5 = vld [vmem:[%s932_s3 + $0x18] sm:$0xff] }
  0x22   : > { %342 = vmatpush.msrb.mxu2 %v583_v24  ;;  %470 = vmatpush.msrb.mxu1 %v618_v51  ;;  %v612_v6 = vld [vmem:[%s932_s3 + $0x138] sm:$0xff]  ;;  %v370_v7 = vld [vmem:[%s932_s3 + $0x10] sm:$0xff]  ;;  %v369_v9 = vld [vmem:[%s932_s3 + $0x8] sm:$0xff] }
  0x23   : > { %576 = vmatmul.msk.f32.gmra.mxu2 %vm230_vm1, %v246_v25  ;;  %410 = vmatpush.msra.mxu3 %v597_v44  ;;  %v611_v8 = vld [vmem:[%s932_s3 + $0x130] sm:$0xff]  ;;  %v610_v10 = vld [vmem:[%s932_s3 + $0x128] sm:$0xff]  ;;  %v368_v11 = vld [vmem:[%s932_s3] sm:$0xff] }
  0x24   : > { %343 = vmatpush.msrb.mxu2 %v582_v26  ;;  %578 = vmatmul.msk.f32.gmra.mxu1 %vm230_vm1, %v236_v27  ;;  %v609_v12 = vld [vmem:[%s932_s3 + $0x120] sm:$0xff]  ;;  %v608_v13 = vld [vmem:[%s932_s3 + $0x118] sm:$0xff]  ;;  %v607_v14 = vld [vmem:[%s932_s3 + $0x110] sm:$0xff] }
  0x25   : > { %411 = vmatpush.msra.mxu3 %v596_v47  ;;  %431 = vmatpush.msra.mxu0 %v378_v48  ;;  %v606_v16 = vld [vmem:[%s932_s3 + $0x108] sm:$0xff]  ;;  %v605_v17 = vld [vmem:[%s932_s3 + $0x100] sm:$0xff] }
  0x26   : > { %344 = vmatpush.msrb.mxu2 %v581_v28  ;;  %471 = vmatpush.msrb.mxu1 %v617_v53  ;;  %v634_v21 = vld [vmem:[%s931_s2] ss:$0 sm:$0xff] }
  0x27   : > { %432 = vmatpush.msra.mxu0 %v377_v50  ;;  %412 = vmatpush.msra.mxu3 %v595_v54  ;;  %v635_v39 = vld [vmem:[%s933_s4] ss:$0 sm:$0xff] }
  0x28   : > { %345 = vmatpush.msrb.mxu2 %v580_v29  ;;  %472 = vmatpush.msrb.mxu1 %v616_v58 }
  0x29   : > { %433 = vmatpush.msra.mxu0 %v376_v52  ;;  %413 = vmatpush.msra.mxu3 %v594_v55 }
  0x2a   : > { %346 = vmatpush.msrb.mxu2 %v579_v30  ;;  %473 = vmatpush.msrb.mxu1 %v615_v61 }
  0x2b   : > { %587 = vmatmul.msk.f32.vlgmr.msrb.gmra.mxu2 %vm230_vm1, %v314_v31  ;;  %434 = vmatpush.msra.mxu0 %v375_v57 }
  0x2c   : > { %414 = vmatpush.msra.mxu3 %v593_v56  ;;  %474 = vmatpush.msrb.mxu1 %v614_v0 }
  0x2d   : > { %435 = vmatpush.msra.mxu0 %v374_v60 }
  0x2e   : > { %415 = vmatpush.msra.mxu3 %v592_v59  ;;  %475 = vmatpush.msrb.mxu1 %v613_v3 }
  0x2f   : > { %436 = vmatpush.msra.mxu0 %v373_v63 }
  0x30   : > { %416 = vmatpush.msra.mxu3 %v591_v62  ;;  %476 = vmatpush.msrb.mxu1 %v612_v6 }
  0x31   : > { %437 = vmatpush.msra.mxu0 %v372_v2 }
  0x32   : > { %417 = vmatpush.msra.mxu3 %v590_v1  ;;  %477 = vmatpush.msrb.mxu1 %v611_v8 }
  0x33   : > { %588 = vmatmul.msk.f32.gmra.mxu2 %vm230_vm1, %v315_v32  ;;  %438 = vmatpush.msra.mxu0 %v371_v5 }
  0x34   : > { %418 = vmatpush.msra.mxu3 %v589_v4  ;;  %478 = vmatpush.msrb.mxu1 %v610_v10 }
  0x35   : > { %439 = vmatpush.msra.mxu0 %v370_v7 }
  0x36   : > { %479 = vmatpush.msrb.mxu1 %v609_v12 }
  0x37   : > { %440 = vmatpush.msra.mxu0 %v369_v9 }
  0x38   : > { %480 = vmatpush.msrb.mxu1 %v608_v13 }
  0x39   : > { %441 = vmatpush.msra.mxu0 %v368_v11 }
  0x3a   : > { %481 = vmatpush.msrb.mxu1 %v607_v14 }
  0x3c   : > { %482 = vmatpush.msrb.mxu1 %v606_v16 }
  0x3e   : > { %483 = vmatpush.msrb.mxu1 %v605_v17 }
  0x99   : > { %v308_v19 = vpop.f32.mrf.mxu1 }
  0x9e   : > { %v279_v15 = vpop.f32.mrf.mxu2 }
  0x9f   : > { %v309_v20 = vadd.f32 %v308_v19, %v279_v15 }
  0xa1   : > { %v311_v25 = vpop.f32.mrf.mxu1 }
  0xa6   : > { %v282_v18 = vpop.f32.mrf.mxu2 }
  0xa7   : > { %v312_v27 = vadd.f32 %v311_v25, %v282_v18 }
  0xae   : > { %v348_v22 = vpop.f32.mrf.mxu2 }
  0xaf   : > { %v354_v23 = vadd.f32 %v348_v22, %v309_v20 }
  0xb1   : > { %v360_v24 = vadd.f32 %v634_v21, %v354_v23 }
  0xb3   : > { %v362_v26 = vmax.f32 %v360_v24, 0.0 }
  0xb5   : > { %364 = vst [vmem:[#allocation3 + $0x1] sm:$0xff] %v362_v26  ;;  %419 = vmatmul.f32.vlgmr.msra.gmra.mxu3 %v362_v26 }
  0xb6   : > { %v351_v28 = vpop.f32.mrf.mxu2 }
  0xb7   : > { %v355_v29 = vadd.f32 %v351_v28, %v312_v27 }
  0xb9   : > { %v361_v30 = vadd.f32 %v634_v21, %v355_v29 }
  0xbb   : > { %v363_v31 = vmax.f32 %v361_v30, 0.0 }
  0xbc   : > { %v366_v32 = vld [vmem:[#allocation3] sm:$0xff] }
  0xbd   : > { %365 = vst [vmem:[#allocation3 + $0x9] sm:$0xff] %v363_v31  ;;  %442 = vmatmul.f32.vlgmr.msra.gmra.mxu0 %v366_v32  ;;  %422 = vmatmul.f32.gmra.mxu3 %v363_v31 }
  0xc4   : > { %v367_v33 = vld [vmem:[#allocation3 + $0x8] sm:$0xff] }
  0xc5   : > { %v449_v34 = vld [vmem:[#allocation3 + $0x2] sm:$0xff]  ;;  %445 = vmatmul.f32.gmra.mxu0 %v367_v33  ;;  %v450_v35 = vld [vmem:[#allocation3 + $0xa] sm:$0xff] }
  0xc6   : > { %484 = vmatmul.f32.vlgmr.msrb.gmra.mxu1 %v449_v34 }
  0xce   : > { %487 = vmatmul.f32.gmra.mxu1 %v450_v35 }
 0x138   : > { %v420_v37 = vpop.f32.mrf.mxu3 }
 0x13a   : > { %v443_v36 = vpop.f32.mrf.mxu0 }
 0x13b   : > { %v444_v38 = vadd.f32 %v443_v36, %v420_v37 }
 0x140   : > { %v423_v45 = vpop.f32.mrf.mxu3 }
 0x142   : > { %v446_v43 = vpop.f32.mrf.mxu0 }
 0x143   : > { %v485_v40 = vpop.f32.mrf.mxu1  ;;  %v447_v46 = vadd.f32 %v446_v43, %v423_v45 }
 0x144   : > { %v491_v41 = vadd.f32 %v485_v40, %v444_v38 }
 0x146   : > { %v497_v42 = vadd.f32 %v635_v39, %v491_v41 }
 0x148   : > { %v499_v44 = vmax.f32 %v497_v42, 0.0 }
 0x14a   : > { %501 = vst [vmem:[%s224_s17] sm:$0xff] %v499_v44 }
 0x14b   : > { %v488_v47 = vpop.f32.mrf.mxu1 }
 0x14c   : > { %v492_v48 = vadd.f32 %v488_v47, %v447_v46 }
 0x14e   : > { %v498_v49 = vadd.f32 %v635_v39, %v492_v48 }
 0x150   : > { %v500_v50 = vmax.f32 %v498_v49, 0.0 }
 0x152   : > { %502 = vst [vmem:[%s224_s17 + $0x8] sm:$0xff] %v500_v50 }
 0x153 PF: > { %s15_s18 = sadd.s32 1, %s642_s18  }
 0x154   : > { %p12_p4 = scmp.ge.s32.totalorder %s15_s18, 4  }
 0x156   :  { %14 = sbr.rel (!%p12_p4) target bundleno = 1 (0x1), region = 74 }

</bundles_post_ra>
